<compile_context>
chip_gen: v7x
topology: tpu7x:2x2x1
jax: 0.10.0
libtpu: 0.0.40
codegen_flags: <defaults>
</compile_context>

<pallas_src>
import jax
import jax.numpy as jnp
from jax.experimental import pallas as pl
from jax.experimental.pallas import tpu as pltpu


def downsample_kernel(patch_ref, w_ref, out_ref):
    # patch_ref: (TM, 4*Cin) bf16 | w_ref: (4*Cin, Cout) bf16 | out_ref: (TM, Cout) f32
    out_ref[...] = jnp.dot(
        patch_ref[...], w_ref[...],
        preferred_element_type=jnp.float32).astype(out_ref.dtype)


def downsample_forward(x_nchw, w_oihw):
    """x: (N, Cin, H, W) f32, w: (Cout, Cin, 1, 1) f32 -> (N, Cout, H//2, W//2)."""
    N, C, H, W = x_nchw.shape
    Cout = w_oihw.shape[0]
    Ho, Wo = H // 2, W // 2

    # ---- wrapper-side layout plumbing (reshapes/transposes kept OUT of the kernel) ----
    # NCHW -> NHWC, crop to even spatial size (matches floor(H * 0.5)).
    x = jnp.transpose(x_nchw, (0, 2, 3, 1))[:, :2 * Ho, :2 * Wo, :]
    # im2col for the 2x2/stride-2 window: (N*Ho*Wo, 4*C), bf16 MXU operands.
    patches = x.reshape(N, Ho, 2, Wo, 2, C).transpose(0, 1, 3, 2, 4, 5)
    patches = patches.reshape(N * Ho * Wo, 4 * C).astype(jnp.bfloat16)
    # Fold the average-pool 1/4 into the 1x1 conv weight, replicated over the
    # 4 window taps:  w_big[k*C + c, co] = 0.25 * W[co, c]
    w2d = jnp.transpose(w_oihw.reshape(Cout, C))                  # (C, Cout)
    w_big = (0.25 * jnp.tile(w2d, (4, 1))).astype(jnp.bfloat16)   # (4C, Cout)

    # ---- tiling: one lane-dense (TM, 4C) x (4C, Cout) matmul per grid step ----
    M = N * Ho * Wo
    K = 4 * C
    TM = min(512, ((M + 7) // 8) * 8)          # sublane-aligned tile height
    M_pad = pl.cdiv(M, TM) * TM
    if M_pad != M:
        patches = jnp.pad(patches, ((0, M_pad - M), (0, 0)))

    out2d = pl.pallas_call(
        downsample_kernel,
        out_shape=jax.ShapeDtypeStruct((M_pad, Cout), x_nchw.dtype),
        grid=(M_pad // TM,),
        in_specs=[
            pl.BlockSpec((TM, K), lambda i: (i, 0)),      # patch tile
            pl.BlockSpec((K, Cout), lambda i: (0, 0)),    # fused weight (stays resident)
        ],
        out_specs=pl.BlockSpec((TM, Cout), lambda i: (i, 0)),
        compiler_params=pltpu.CompilerParams(
            dimension_semantics=("parallel",)),           # independent tiles
    )(patches, w_big)

    out = out2d[:M].reshape(N, Ho, Wo, Cout)
    return jnp.transpose(out, (0, 3, 1, 2))               # back to NCHW


def downsample_reference(x_nchw, w_oihw):
    """Pure-JAX f32 reference: exact bilinear(0.5, align_corners=False) + 1x1 conv."""
    N, C, H, W = x_nchw.shape
    Cout = w_oihw.shape[0]
    Ho, Wo = H // 2, W // 2
    xc = x_nchw[:, :, :2 * Ho, :2 * Wo]
    pooled = xc.reshape(N, C, Ho, 2, Wo, 2).mean(axis=(3, 5))     # (N, C, Ho, Wo)
    w2d = w_oihw.reshape(Cout, C)
    return jnp.einsum('oc,nchw->nohw', w2d, pooled)


if __name__ == "__main__":
    # DownSample(in_channels=4, s_factor=4) at a small test size.
    N, C, H, W = 2, 4, 16, 16
    s_factor = 4
    Cout = C + s_factor

    key = jax.random.PRNGKey(0)
    kx, kw = jax.random.split(key, 2)
    x = jax.random.normal(kx, (N, C, H, W), jnp.float32)
    w = jax.random.normal(kw, (Cout, C, 1, 1), jnp.float32) * 0.1

    out = downsample_forward(x, w)
    out = jax.block_until_ready(out)

    ref = downsample_reference(x, w)
    assert out.shape == (N, Cout, H // 2, W // 2), out.shape
    max_diff = float(jnp.max(jnp.abs(out - ref)))
    # bf16 MXU operands with f32 accumulation: expected error ~1e-3 at these scales.
    assert max_diff < 1e-2, f"mismatch vs reference: {max_diff}"

    print("KERNEL_OK")
</pallas_src>

<mosaic_0001>
module attributes {stable_mosaic.version = 11 : i64} {
  func.func @downsample_kernel(%arg0: i32, %arg1: memref<128x16xbf16, #tpu.memory_space<vmem>>, %arg2: memref<16x8xbf16, #tpu.memory_space<vmem>>, %arg3: memref<128x8xf32, #tpu.memory_space<vmem>>) attributes {dimension_semantics = [#tpu.dimension_semantics<parallel>], iteration_bounds = array<i64: 1>, scalar_prefetch = 0 : i64, scratch_operands = 0 : i64, tpu.core_type = #tpu.core_type<tc>, window_params = [{transform_indices = @transform_0, window_bounds = array<i64: 128, 16>}, {pipeline_mode = #tpu.pipeline_mode<synchronous>, transform_indices = @transform_1, window_bounds = array<i64: 16, 8>}, {transform_indices = @transform_2, window_bounds = array<i64: 128, 8>}]} {
    %c0 = arith.constant 0 : index
    %c0_0 = arith.constant 0 : index
    %0 = vector.load %arg1[%c0, %c0_0] : memref<128x16xbf16, #tpu.memory_space<vmem>>, vector<128x16xbf16>
    %c0_1 = arith.constant 0 : index
    %c0_2 = arith.constant 0 : index
    %1 = vector.load %arg2[%c0_1, %c0_2] : memref<16x8xbf16, #tpu.memory_space<vmem>>, vector<16x8xbf16>
    %cst = arith.constant dense<0.000000e+00> : vector<128x8xf32>
    %2 = tpu.matmul %0, %1, %cst {dimension_numbers = #tpu.dot_dimension_numbers<[1], [0], [0], [1], [0, 0, 1, 1], [], []>} : vector<128x16xbf16>, vector<16x8xbf16>, vector<128x8xf32> -> vector<128x8xf32>
    %c0_3 = arith.constant 0 : index
    %c0_4 = arith.constant 0 : index
    %3 = vector.load %arg3[%c0_3, %c0_4] : memref<128x8xf32, #tpu.memory_space<vmem>>, vector<128x8xf32>
    tpu.vector_store %arg3[%c0_3, %c0_4], %2 {strides = array<i32>} : memref<128x8xf32, #tpu.memory_space<vmem>>, vector<128x8xf32>,
    return
  }
  func.func @transform_0(%arg0: i32) -> (i32, i32) {
    %c0_i32 = arith.constant 0 : i32
    %c0_i32_0 = arith.constant 0 : i32
    return %arg0, %c0_i32 : i32, i32
  }
  func.func @transform_1(%arg0: i32) -> (i32, i32) {
    %c0_i32 = arith.constant 0 : i32
    %c0_i32_0 = arith.constant 0 : i32
    %c0_i32_1 = arith.constant 0 : i32
    return %c0_i32, %c0_i32_0 : i32, i32
  }
  func.func @transform_2(%arg0: i32) -> (i32, i32) {
    %c0_i32 = arith.constant 0 : i32
    %c0_i32_0 = arith.constant 0 : i32
    return %arg0, %c0_i32 : i32, i32
  }
}

</mosaic_0001>

<bundles_post_ra>
// kernel: tpu_custom_call.1
= control target key start
LH: loop header
LB: loop body
LE: loop exit
PB: predicated region body
PF: predicated region fallthrough
CT: control target
= control target key end

     0   :  { %vm76_vm0 = vcmask 130048   ;;  %vm198_vm1 = vcmask 64512   ;;  %s388_s1 = inlined_call_operand.vmem [shape: bf16[16,8], index: 1, kind: input, shape index: {}]   ;;  %s389_s0 = inlined_call_operand.vmem [shape: bf16[128,16], index: 0, kind: input, shape index: {}]   ;;  %s390_s2 = inlined_call_operand.vmem [shape: f32[128,8], index: 2, kind: output, shape index: {}]  }
   0x1   :  { %v265_v0 = vld [vmem:[%s388_s1] sm:$0xff]   ;;  %v268_v3 = vld [vmem:[%s389_s0 + $0x8] sm:$0xff]   ;;  %v270_v5 = vld [vmem:[%s389_s0 + $0x10] sm:$0xff]  }
   0x2   :  { %v266_v1 = vld [vmem:[%s389_s0] sm:$0xff]   ;;  %245 = vmatprep.subr.bf16.mxu0 %v265_v0  ;;  %263 = vmatprep.subr.bf16.mxu1 %v265_v0  ;;  %v269_v4 = vld [vmem:[%s389_s0 + $0x28] sm:$0xff]   ;;  %v271_v6 = vld [vmem:[%s389_s0 + $0x30] sm:$0xff]  }
   0x3   :  { %v267_v2 = vld [vmem:[%s389_s0 + $0x20] sm:$0xff]   ;;  %246 = vmatpush3.bf16.msra.mxu0 %v265_v0  ;;  %264 = vmatpush3.bf16.msra.mxu1 %v265_v0  ;;  %v272_v7 = vld [vmem:[%s389_s0 + $0x18] sm:$0xff]  }
   0x4   :  { %247 = vmatprep.mubr.msk.bf16.mxu0 %vm76_vm0, %v266_v1  ;;  %255 = vmatprep.mubr.msk.bf16.mxu1 %vm76_vm0, %v267_v2  ;;  %v273_v8 = vld [vmem:[%s389_s0 + $0x38] sm:$0xff]  }
   0x6   :  { %248 = vmatmul.mubr.msk.bf16.vlgmr.msra.gmra.mrb[0].mxu0 %vm76_vm0, %v268_v3  ;;  %256 = vmatmul.mubr.msk.bf16.vlgmr.msra.gmra.mrb[0].mxu1 %vm76_vm0, %v269_v4 }
   0x7   :  { %251 = vmatprep.mubr.msk.bf16.mxu0 %vm76_vm0, %v270_v5  ;;  %259 = vmatprep.mubr.msk.bf16.mxu1 %vm76_vm0, %v271_v6 }
   0xe   :  { %252 = vmatmul.mubr.msk.bf16.gmra.mrb[4].mxu0 %vm76_vm0, %v272_v7  ;;  %260 = vmatmul.mubr.msk.bf16.gmra.mrb[4].mxu1 %vm76_vm0, %v273_v8 }
  0xd9   :  { %v249_v9 = vpop.f32.mrb[0].mxu0  ;;  %v257_v10 = vpop.f32.mrb[0].mxu1 }
  0xda   :  { %201 = vst.msk [vmem:[%s390_s2 + $0x10] sm:$0xff] %vm198_vm1, %v249_v9  ;;  %209 = vst.msk [vmem:[%s390_s2 + $0x50] sm:$0xff] %vm198_vm1, %v257_v10  ;;  %v135_v11 = vpop.f32.mrb[1].mxu0  ;;  %v167_v12 = vpop.f32.mrb[1].mxu1 }
  0xdb   :  { %199 = vst.msk [vmem:[%s390_s2] sm:$0xff] %vm198_vm1, %v135_v11  ;;  %207 = vst.msk [vmem:[%s390_s2 + $0x40] sm:$0xff] %vm198_vm1, %v167_v12  ;;  %v250_v13 = vpop.f32.mrb[2].mxu0  ;;  %v258_v14 = vpop.f32.mrb[2].mxu1 }
  0xdc   :  { %202 = vst.msk [vmem:[%s390_s2 + $0x18] sm:$0xff] %vm198_vm1, %v250_v13  ;;  %210 = vst.msk [vmem:[%s390_s2 + $0x58] sm:$0xff] %vm198_vm1, %v258_v14  ;;  %v138_v15 = vpop.f32.mrb[3].mxu0  ;;  %v170_v16 = vpop.f32.mrb[3].mxu1 }
  0xdd   :  { %200 = vst.msk [vmem:[%s390_s2 + $0x8] sm:$0xff] %vm198_vm1, %v138_v15  ;;  %208 = vst.msk [vmem:[%s390_s2 + $0x48] sm:$0xff] %vm198_vm1, %v170_v16 }
  0xe1   :  { %v253_v17 = vpop.f32.mrb[4].mxu0  ;;  %v261_v18 = vpop.f32.mrb[4].mxu1 }
  0xe2   :  { %205 = vst.msk [vmem:[%s390_s2 + $0x30] sm:$0xff] %vm198_vm1, %v253_v17  ;;  %213 = vst.msk [vmem:[%s390_s2 + $0x70] sm:$0xff] %vm198_vm1, %v261_v18  ;;  %v151_v19 = vpop.f32.mrb[5].mxu0  ;;  %v183_v20 = vpop.f32.mrb[5].mxu1 }
  0xe3   :  { %203 = vst.msk [vmem:[%s390_s2 + $0x20] sm:$0xff] %vm198_vm1, %v151_v19  ;;  %211 = vst.msk [vmem:[%s390_s2 + $0x60] sm:$0xff] %vm198_vm1, %v183_v20  ;;  %v254_v21 = vpop.f32.mrb[6].mxu0  ;;  %v262_v22 = vpop.f32.mrb[6].mxu1 }
  0xe4   :  { %206 = vst.msk [vmem:[%s390_s2 + $0x38] sm:$0xff] %vm198_vm1, %v254_v21  ;;  %214 = vst.msk [vmem:[%s390_s2 + $0x78] sm:$0xff] %vm198_vm1, %v262_v22  ;;  %v154_v23 = vpop.f32.mrb[7].mxu0  ;;  %v186_v24 = vpop.f32.mrb[7].mxu1 }
  0xe5   :  { %204 = vst.msk [vmem:[%s390_s2 + $0x28] sm:$0xff] %vm198_vm1, %v154_v23  ;;  %212 = vst.msk [vmem:[%s390_s2 + $0x68] sm:$0xff] %vm198_vm1, %v186_v24 }

</bundles_post_ra>
